<compile_context>
chip_gen: v5e
topology: v5e:2x2
jax: 0.10.0
libtpu: 0.0.40
codegen_flags: <defaults>
</compile_context>

<pallas_src>
import jax
import jax.numpy as jnp
from jax.experimental import pallas as pl
from jax.experimental.pallas import tpu as pltpu


def _trpo_critic_kernel(xt_ref, w1_ref, b1_ref, w2_ref, b2_ref, w3_ref, b3_ref,
                        v_ref):
    """One batch tile. Shapes (F = num_inputs, TB = batch tile on lanes):
        xt_ref: (F, TB)    w1: (32, F)   b1: (32, 1)
        w2: (32, 32)       b2: (32, 1)
        w3: (32, 1)        b3: (1, 1)    v_ref: (1, TB)
    """
    xt = xt_ref[...]                                              # (F, TB)
    h1 = jnp.tanh(
        jnp.dot(w1_ref[...], xt, preferred_element_type=jnp.float32)
        + b1_ref[...])                                            # (32, TB)
    h2 = jnp.tanh(
        jnp.dot(w2_ref[...], h1, preferred_element_type=jnp.float32)
        + b2_ref[...])                                            # (32, TB)
    # fc3 (32 -> 1): keep it off the MXU — VPU multiply + XLU sublane reduce.
    v = jnp.sum(w3_ref[...] * h2, axis=0, keepdims=True) + b3_ref[...]  # (1, TB)
    v_ref[...] = v.astype(v_ref.dtype)


def _round_up(n, m):
    return pl.cdiv(n, m) * m


def trpo_critic_forward(x, params, tile_b=1024):
    """x: (B, num_inputs) f32.  params: w1 (32,F), b1 (32,1), w2 (32,32),
    b2 (32,1), w3 (32,1) [fc3 weight as a column], b3 (1,1).  Returns (B, 1)."""
    B, num_inputs = x.shape

    # Batch tile: multiple of 128 lanes, capped at tile_b.
    TB = min(_round_up(tile_b, 128), _round_up(B, 128))
    num_tiles = pl.cdiv(B, TB)
    B_pad = num_tiles * TB

    # Layout plumbing in the wrapper: pad the batch to a tile multiple and
    # transpose so batch maps to the 128-lane axis inside the kernel.
    if B_pad != B:
        x = jnp.pad(x, ((0, B_pad - B), (0, 0)))
    xt = x.T                                                      # (F, B_pad)

    w1, b1 = params["w1"], params["b1"]
    w2, b2 = params["w2"], params["b2"]
    w3, b3 = params["w3"], params["b3"]

    # Weights/biases: constant block index -> stay resident in VMEM across the
    # whole batch loop (no per-tile re-DMA).
    const = lambda a: pl.BlockSpec(a.shape, lambda i: (0, 0))

    def build(buffered):
        if buffered:
            # Deeper input pipelining: per-tile compute is tiny, so hide the
            # HBM fetch latency behind it with a 3-deep buffer.
            x_spec = pl.BlockSpec((num_inputs, TB), lambda i: (0, i),
                                  pipeline_mode=pl.Buffered(3))
        else:
            x_spec = pl.BlockSpec((num_inputs, TB), lambda i: (0, i))
        return pl.pallas_call(
            _trpo_critic_kernel,
            out_shape=jax.ShapeDtypeStruct((1, B_pad), jnp.float32),
            grid_spec=pltpu.PrefetchScalarGridSpec(
                num_scalar_prefetch=0,
                grid=(num_tiles,),
                in_specs=[x_spec, const(w1), const(b1), const(w2), const(b2),
                          const(w3), const(b3)],
                out_specs=pl.BlockSpec((1, TB), lambda i: (0, i)),
            ),
            compiler_params=pltpu.CompilerParams(
                # Independent batch tiles -> shard across both TCs on v7x.
                dimension_semantics=("parallel",)),
        )

    args = (xt, w1, b1, w2, b2, w3, b3)
    try:
        vt = build(True)(*args)
    except Exception:
        # Fall back to default double-buffering if pl.Buffered(3) is not
        # accepted by this jax version.
        vt = build(False)(*args)

    return vt[:, :B].T                                            # (B, 1)


def init_params(key, num_inputs):
    """torch.nn.Linear default init (uniform +-1/sqrt(fan_in)); fc3 weight
    scaled by 0.1, fc3 bias zeroed. Weights kept in PyTorch (out, in) layout;
    fc3 weight stored as a (32, 1) column for the VPU head."""
    k = jax.random.split(key, 6)

    def lin(kw, kb, fan_in, fan_out):
        bound = 1.0 / jnp.sqrt(jnp.float32(fan_in))
        w = jax.random.uniform(kw, (fan_out, fan_in), jnp.float32, -bound, bound)
        b = jax.random.uniform(kb, (fan_out, 1), jnp.float32, -bound, bound)
        return w, b

    w1, b1 = lin(k[0], k[1], num_inputs, 32)
    w2, b2 = lin(k[2], k[3], 32, 32)
    w3, b3 = lin(k[4], k[5], 32, 1)
    w3 = w3 * 0.1                       # fc3.weight.data.mul_(0.1)
    b3 = b3 * 0.0                       # fc3.bias.data.mul_(0.0)
    return dict(w1=w1, b1=b1, w2=w2, b2=b2, w3=w3.T, b3=b3)


def _reference_forward(x, p):
    h1 = jnp.tanh(x @ p["w1"].T + p["b1"].T)
    h2 = jnp.tanh(h1 @ p["w2"].T + p["b2"].T)
    return h2 @ p["w3"] + p["b3"].T


if __name__ == "__main__":
    key = jax.random.PRNGKey(0)
    kx, kx2, kp = jax.random.split(key, 3)

    num_inputs = 16
    params = init_params(kp, num_inputs)

    # Small case (single padded tile).
    batch = 8
    x = jax.random.normal(kx, (batch, num_inputs), jnp.float32)
    v = jax.block_until_ready(trpo_critic_forward(x, params))
    v_ref = _reference_forward(x, params)
    assert v.shape == (batch, 1)
    assert jnp.allclose(v, v_ref, atol=1e-5, rtol=1e-5)

    # Multi-tile case with a ragged final tile (forces grid + padding path).
    batch2 = 300
    x2 = jax.random.normal(kx2, (batch2, num_inputs), jnp.float32)
    v2 = jax.block_until_ready(trpo_critic_forward(x2, params, tile_b=128))
    v2_ref = _reference_forward(x2, params)
    assert v2.shape == (batch2, 1)
    assert jnp.allclose(v2, v2_ref, atol=1e-5, rtol=1e-5)

    print("KERNEL_OK")
</pallas_src>

<mosaic_0001>
module attributes {stable_mosaic.version = 11 : i64} {
  func.func @_trpo_critic_kernel(%arg0: i32, %arg1: memref<16x128xf32, #tpu.memory_space<vmem>>, %arg2: memref<32x16xf32, #tpu.memory_space<vmem>>, %arg3: memref<32x1xf32, #tpu.memory_space<vmem>>, %arg4: memref<32x32xf32, #tpu.memory_space<vmem>>, %arg5: memref<32x1xf32, #tpu.memory_space<vmem>>, %arg6: memref<32x1xf32, #tpu.memory_space<vmem>>, %arg7: memref<1x1xf32, #tpu.memory_space<vmem>>, %arg8: memref<1x128xf32, #tpu.memory_space<vmem>>) attributes {dimension_semantics = [#tpu.dimension_semantics<parallel>], iteration_bounds = array<i64: 1>, scalar_prefetch = 0 : i64, scratch_operands = 0 : i64, tpu.core_type = #tpu.core_type<tc>, window_params = [{transform_indices = @transform_0, window_bounds = array<i64: 16, 128>}, {pipeline_mode = #tpu.pipeline_mode<synchronous>, transform_indices = @transform_1, window_bounds = array<i64: 32, 16>}, {pipeline_mode = #tpu.pipeline_mode<synchronous>, transform_indices = @transform_2, window_bounds = array<i64: 32, 1>}, {pipeline_mode = #tpu.pipeline_mode<synchronous>, transform_indices = @transform_3, window_bounds = array<i64: 32, 32>}, {pipeline_mode = #tpu.pipeline_mode<synchronous>, transform_indices = @transform_4, window_bounds = array<i64: 32, 1>}, {pipeline_mode = #tpu.pipeline_mode<synchronous>, transform_indices = @transform_5, window_bounds = array<i64: 32, 1>}, {pipeline_mode = #tpu.pipeline_mode<synchronous>, transform_indices = @transform_6, window_bounds = array<i64: 1, 1>}, {transform_indices = @transform_7, window_bounds = array<i64: 1, 128>}]} {
    %c0 = arith.constant 0 : index
    %c0_0 = arith.constant 0 : index
    %0 = vector.load %arg1[%c0, %c0_0] : memref<16x128xf32, #tpu.memory_space<vmem>>, vector<16x128xf32>
    %c0_1 = arith.constant 0 : index
    %c0_2 = arith.constant 0 : index
    %1 = vector.load %arg2[%c0_1, %c0_2] : memref<32x16xf32, #tpu.memory_space<vmem>>, vector<32x16xf32>
    %cst = arith.constant dense<0.000000e+00> : vector<32x128xf32>
    %2 = tpu.matmul %1, %0, %cst {dimension_numbers = #tpu.dot_dimension_numbers<[1], [0], [0], [1], [0, 0, 1, 1], [], []>} : vector<32x16xf32>, vector<16x128xf32>, vector<32x128xf32> -> vector<32x128xf32>
    %c0_3 = arith.constant 0 : index
    %c0_4 = arith.constant 0 : index
    %3 = vector.load %arg3[%c0_3, %c0_4] : memref<32x1xf32, #tpu.memory_space<vmem>>, vector<32x1xf32>
    %4 = vector.broadcast %3 : vector<32x1xf32> to vector<32x128xf32>
    %5 = arith.addf %2, %4 : vector<32x128xf32>
    %6 = math.tanh %5 : vector<32x128xf32>
    %c0_5 = arith.constant 0 : index
    %c0_6 = arith.constant 0 : index
    %7 = vector.load %arg4[%c0_5, %c0_6] : memref<32x32xf32, #tpu.memory_space<vmem>>, vector<32x32xf32>
    %cst_7 = arith.constant dense<0.000000e+00> : vector<32x128xf32>
    %8 = tpu.matmul %7, %6, %cst_7 {dimension_numbers = #tpu.dot_dimension_numbers<[1], [0], [0], [1], [0, 0, 1, 1], [], []>} : vector<32x32xf32>, vector<32x128xf32>, vector<32x128xf32> -> vector<32x128xf32>
    %c0_8 = arith.constant 0 : index
    %c0_9 = arith.constant 0 : index
    %9 = vector.load %arg5[%c0_8, %c0_9] : memref<32x1xf32, #tpu.memory_space<vmem>>, vector<32x1xf32>
    %10 = vector.broadcast %9 : vector<32x1xf32> to vector<32x128xf32>
    %11 = arith.addf %8, %10 : vector<32x128xf32>
    %12 = math.tanh %11 : vector<32x128xf32>
    %c0_10 = arith.constant 0 : index
    %c0_11 = arith.constant 0 : index
    %13 = vector.load %arg6[%c0_10, %c0_11] : memref<32x1xf32, #tpu.memory_space<vmem>>, vector<32x1xf32>
    %14 = vector.broadcast %13 : vector<32x1xf32> to vector<32x128xf32>
    %15 = arith.mulf %14, %12 : vector<32x128xf32>
    %cst_12 = arith.constant dense<0.000000e+00> : vector<128xf32>
    %16 = vector.multi_reduction <add>, %15, %cst_12 [0] : vector<32x128xf32> to vector<128xf32>
    %17 = vector.shape_cast %16 : vector<128xf32> to vector<1x128xf32>
    %c0_13 = arith.constant 0 : index
    %c0_14 = arith.constant 0 : index
    %18 = vector.load %arg7[%c0_13, %c0_14] : memref<1x1xf32, #tpu.memory_space<vmem>>, vector<1x1xf32>
    %19 = vector.broadcast %18 : vector<1x1xf32> to vector<1x128xf32>
    %20 = arith.addf %17, %19 : vector<1x128xf32>
    %c0_15 = arith.constant 0 : index
    %c0_16 = arith.constant 0 : index
    %21 = vector.load %arg8[%c0_15, %c0_16] : memref<1x128xf32, #tpu.memory_space<vmem>>, vector<1x128xf32>
    tpu.vector_store %arg8[%c0_15, %c0_16], %20 {strides = array<i32>} : memref<1x128xf32, #tpu.memory_space<vmem>>, vector<1x128xf32>,
    return
  }
  func.func @transform_0(%arg0: i32) -> (i32, i32) {
    %c0_i32 = arith.constant 0 : i32
    %c0_i32_0 = arith.constant 0 : i32
    return %c0_i32, %arg0 : i32, i32
  }
  func.func @transform_1(%arg0: i32) -> (i32, i32) {
    %c0_i32 = arith.constant 0 : i32
    %c0_i32_0 = arith.constant 0 : i32
    %c0_i32_1 = arith.constant 0 : i32
    return %c0_i32, %c0_i32_0 : i32, i32
  }
  func.func @transform_2(%arg0: i32) -> (i32, i32) {
    %c0_i32 = arith.constant 0 : i32
    %c0_i32_0 = arith.constant 0 : i32
    %c0_i32_1 = arith.constant 0 : i32
    return %c0_i32, %c0_i32_0 : i32, i32
  }
  func.func @transform_3(%arg0: i32) -> (i32, i32) {
    %c0_i32 = arith.constant 0 : i32
    %c0_i32_0 = arith.constant 0 : i32
    %c0_i32_1 = arith.constant 0 : i32
    return %c0_i32, %c0_i32_0 : i32, i32
  }
  func.func @transform_4(%arg0: i32) -> (i32, i32) {
    %c0_i32 = arith.constant 0 : i32
    %c0_i32_0 = arith.constant 0 : i32
    %c0_i32_1 = arith.constant 0 : i32
    return %c0_i32, %c0_i32_0 : i32, i32
  }
  func.func @transform_5(%arg0: i32) -> (i32, i32) {
    %c0_i32 = arith.constant 0 : i32
    %c0_i32_0 = arith.constant 0 : i32
    %c0_i32_1 = arith.constant 0 : i32
    return %c0_i32, %c0_i32_0 : i32, i32
  }
  func.func @transform_6(%arg0: i32) -> (i32, i32) {
    %c0_i32 = arith.constant 0 : i32
    %c0_i32_0 = arith.constant 0 : i32
    %c0_i32_1 = arith.constant 0 : i32
    return %c0_i32, %c0_i32_0 : i32, i32
  }
  func.func @transform_7(%arg0: i32) -> (i32, i32) {
    %c0_i32 = arith.constant 0 : i32
    %c0_i32_0 = arith.constant 0 : i32
    return %c0_i32, %arg0 : i32, i32
  }
}

</mosaic_0001>

<bundles_post_ra>
// kernel: tpu_custom_call.1
= control target key start
LH: loop header
LB: loop body
LE: loop exit
PB: predicated region body
PF: predicated region fallthrough
CT: control target
= control target key end

     0   :  { %s420_s0 = inlined_call_operand.vmem [shape: f32[16,128], index: 0, kind: input, shape index: {}]   ;;  %s421_s1 = inlined_call_operand.vmem [shape: f32[32,16], index: 1, kind: input, shape index: {}]   ;;  %s422_s2 = inlined_call_operand.vmem [shape: f32[32,1], index: 2, kind: input, shape index: {}]   ;;  %s423_s3 = inlined_call_operand.vmem [shape: f32[32,32], index: 3, kind: input, shape index: {}]   ;;  %s424_s4 = inlined_call_operand.vmem [shape: f32[32,1], index: 4, kind: input, shape index: {}]   ;;  %s425_s5 = inlined_call_operand.vmem [shape: f32[32,1], index: 5, kind: input, shape index: {}]   ;;  %s426_s6 = inlined_call_operand.<no memory space> [shape: f32[1,1], index: 6, kind: input, shape index: {}]   ;;  %s427_s7 = inlined_call_operand.hbm [shape: f32[1,128], index: 7, kind: output, shape index: {}]  }
   0x1   :  { %v12_v0 = vstv %s426_s6 }
   0x2   :  { %13 = vst [vmem:[#allocation2] sm:$0x1] %v12_v0 }
   0x3   :  { %v30_v1 = vld [vmem:[%s420_s0 + $0x8] sm:$0xff]  ;;  %v38_v2 = vld [vmem:[%s422_s2 + $0x18] sm:$0xff]  ;;  %v29_v3 = vld [vmem:[%s420_s0] sm:$0xff]  ;;  %v302_v4 = vmov 0   ;;  %vm59_vm0 = vcmask 130048  }
   0x4   :  { %257 = vset.pattern.permute.xlu0 %v302_v4  ;;  %249 = vmatpush.msra.mxu3 %v30_v1  ;;  %v32_v5 = vld [vmem:[%s421_s1 + $0x8] sm:$0xff]  ;;  %v31_v7 = vld [vmem:[%s421_s1] sm:$0xff] }
   0x5   :  { %v36_v6 = vld [vmem:[%s422_s2 + $0x8] sm:$0xff]  ;;  %56 = vperm.xlu0 %257, %v38_v2   ;;  %258 = vset.pattern.permute.xlu1 %v302_v4 }
   0x6   :  { %250 = vmatpush.msra.mxu3 %v29_v3  ;;  %46 = vperm.xlu1 %258, %v36_v6  }
   0x7   :  { %242 = vmatmul.msk.f32.vlgmr.msra.gmra.mxu3 %vm59_vm0, %v32_v5  ;;  %86 = vmatpush.msra.mxu0 %v30_v1 }
   0x8   :  { %259 = vset.pattern.permute.xlu2 %v302_v4 }
   0x9   :  { %14 = vsyncpa [#allocation4], 0  ;;  %87 = vmatpush.msra.mxu0 %v29_v3  ;;  %v37_v8 = vld [vmem:[%s422_s2 + $0x10] sm:$0xff]  ;;  %v35_v9 = vld [vmem:[%s422_s2] sm:$0xff]  ;;  %vm133_vm1 = vcmask 261120   ;;  %s232_s19 = sshll.u32 %s427_s7, 4  ;;  %s233_s19 = int_to_ptr.hbm [resolvable:$true] %s232_s19 }
   0xa   :  { %241 = vmatmul.msk.f32.vlgmr.msra.gmra.mxu0 %vm59_vm0, %v31_v7  ;;  %v33_v10 = vld [vmem:[%s421_s1 + $0x10] sm:$0xff]  ;;  %v112_v12 = vld [vmem:[%s424_s4 + $0x18] sm:$0xff]  ;;  %v180_v14 = vld [vmem:[%s425_s5 + $0x8] sm:$0xff] }
   0xb   :  { %v111_v11 = vld [vmem:[%s424_s4 + $0x10] sm:$0xff]  ;;  %v34_v13 = vld [vmem:[%s421_s1 + $0x18] sm:$0xff]  ;;  %v216_v16 = vld [vmem:[#allocation2] sm:$0x1] }
   0xc   :  { %v181_v15 = vld [vmem:[%s425_s5 + $0x10] sm:$0xff]  ;;  %v109_v20 = vld [vmem:[%s424_s4] sm:$0xff]  ;;  %v110_v22 = vld [vmem:[%s424_s4 + $0x8] sm:$0xff] }
   0xd   :  { %51 = vperm.xlu0 %257, %v37_v8   ;;  %115 = vperm.xlu2 %259, %v109_v20   ;;  %v179_v31 = vld [vmem:[%s425_s5] sm:$0xff]  ;;  %v107_v36 = vld [vmem:[%s423_s3 + $0x10] sm:$0xff]  ;;  %v182_v38 = vld [vmem:[%s425_s5 + $0x18] sm:$0xff] }
   0xe   :  { %41 = vperm.xlu1 %258, %v35_v9   ;;  %v105_v35 = vld [vmem:[%s423_s3] sm:$0xff]  ;;  %v106_v39 = vld [vmem:[%s423_s3 + $0x8] sm:$0xff]  ;;  %v108_v40 = vld [vmem:[%s423_s3 + $0x18] sm:$0xff]  ;;  %s303_s3 = smov [#allocation3]  }
   0xf   :  { %243 = vmatmul.msk.f32.gmra.mxu3 %vm59_vm0, %v33_v10  ;;  %s230_s5 = sshll.u32 %s303_s3, 4  ;;  %s231_s5 = int_to_ptr.vmem [resolvable:$true] %s230_s5 }
  0x15   :  { %125 = vperm.xlu0 %257, %v111_v11   ;;  %120 = vperm.xlu2 %259, %v110_v22  }
  0x16   :  { %130 = vperm.xlu1 %258, %v112_v12  }
  0x17   :  { %244 = vmatmul.msk.f32.gmra.mxu3 %vm59_vm0, %v34_v13 }
  0x1d   :  { %190 = vperm.xlu0 %257, %v180_v14   ;;  %185 = vperm.xlu2 %259, %v179_v31  }
  0x1e   :  { %195 = vperm.xlu1 %258, %v181_v15  }
  0x25   :  { %219 = vperm.xlu0 %257, %v216_v16   ;;  %200 = vperm.xlu2 %259, %v182_v38  }
  0x67   :  { %v116_v41 = vpop.permute.xlu2 %115 }
  0x6f   :  { %v121_v43 = vpop.permute.xlu2 %120 }
  0x77   :  { %v57_v18 = vpop.permute.xlu0 %56  ;;  %v186_v51 = vpop.permute.xlu2 %185 }
  0x78   :  { %v47_v21 = vpop.permute.xlu1 %46 }
  0x7f   :  { %v52_v23 = vpop.permute.xlu0 %51  ;;  %v201_v0 = vpop.permute.xlu2 %200 }
  0x80   :  { %v42_v29 = vpop.permute.xlu1 %41 }
  0x87   :  { %v89_v27 = vpop.f32.mrf.mxu0  ;;  %v126_v46 = vpop.permute.xlu0 %125 }
  0x88   :  { %v90_v30 = vadd.f32 %v89_v27, %v42_v29  ;;  %v131_v50 = vpop.permute.xlu1 %130 }
  0x8a   :  { %v92_v17 = vpop.f32.mrf.mxu3 }
  0x8b   :  { %v93_v28 = vadd.f32 %v92_v17, %v47_v21 }
  0x8f   :  { %v191_v56 = vpop.permute.xlu0 %190 }
  0x90   :  { %v196_v61 = vpop.permute.xlu1 %195 }
  0x92   :  { %v95_v19 = vpop.f32.mrf.mxu3 }
  0x93   :  { %v96_v25 = vadd.f32 %v95_v19, %v52_v23 }
  0x97   :  { %v220_v8 = vpop.permute.xlu0 %219 }
  0x98   :  { %v222_v10 = vperm.slane %v220_v8, 0 }
  0x9a   :  { %v98_v24 = vpop.f32.mrf.mxu3 }
  0x9b   :  { %v99_v26 = vadd.f32 %v98_v24, %v57_v18 }
  0x9d   :  { %260 = vtanh.f32 %v99_v26 }
  0x9e   :  { %262 = vtanh.f32 %v96_v25 }
  0x9f   :  { %264 = vtanh.f32 %v93_v28 }
  0xa0   :  { %266 = vtanh.f32 %v90_v30 }
  0xa3   :  { %v261_v32 = vpop.eup %260 }
  0xa4   :  { %158 = vmatpush.msra.mxu1 %v261_v32  ;;  %251 = vmatpush.msra.mxu2 %v261_v32  ;;  %v263_v33 = vpop.eup %262 }
  0xa5   :  { %v265_v34 = vpop.eup %264 }
  0xa6   :  { %159 = vmatpush.msra.mxu1 %v263_v33  ;;  %252 = vmatpush.msra.mxu2 %v263_v33  ;;  %v267_v37 = vpop.eup %266 }
  0xa8   :  { %160 = vmatpush.msra.mxu1 %v265_v34  ;;  %253 = vmatpush.msra.mxu2 %v265_v34 }
  0xaa   :  { %161 = vmatpush.msra.mxu1 %v267_v37  ;;  %254 = vmatpush.msra.mxu2 %v267_v37 }
  0xab   :  { %245 = vmatmul.msk.f32.vlgmr.msra.gmra.mxu1 %vm133_vm1, %v105_v35  ;;  %247 = vmatmul.msk.f32.vlgmr.msra.gmra.mxu2 %vm133_vm1, %v107_v36 }
  0xb3   :  { %246 = vmatmul.msk.f32.gmra.mxu1 %vm133_vm1, %v106_v39  ;;  %248 = vmatmul.msk.f32.gmra.mxu2 %vm133_vm1, %v108_v40 }
 0x128   :  { %v163_v42 = vpop.f32.mrf.mxu1 }
 0x129   :  { %v164_v44 = vadd.f32 %v163_v42, %v116_v41 }
 0x12b   :  { %268 = vtanh.f32 %v164_v44 }
 0x12e   :  { %v169_v45 = vpop.f32.mrf.mxu2 }
 0x12f   :  { %v170_v48 = vadd.f32 %v169_v45, %v126_v46 }
 0x130   :  { %v166_v47 = vpop.f32.mrf.mxu1 }
 0x131   :  { %v167_v49 = vadd.f32 %v166_v47, %v121_v43  ;;  %v269_v53 = vpop.eup %268 }
 0x132   :  { %v203_v57 = vmul.f32 %v269_v53, %v186_v51 }
 0x133   :  { %270 = vtanh.f32 %v167_v49 }
 0x134   :  { %272 = vtanh.f32 %v170_v48 }
 0x136   :  { %v172_v52 = vpop.f32.mrf.mxu2 }
 0x137   :  { %v173_v54 = vadd.f32 %v172_v52, %v131_v50 }
 0x139   :  { %v271_v55 = vpop.eup %270  ;;  %274 = vtanh.f32 %v173_v54 }
 0x13a   :  { %v204_v58 = vmul.f32 %v271_v55, %v191_v56  ;;  %v273_v59 = vpop.eup %272 }
 0x13b   :  { %v205_v62 = vmul.f32 %v273_v59, %v196_v61 }
 0x13c   :  { %v207_v60 = vadd.f32 %v204_v58, %v203_v57 }
 0x13e   :  { %v208_v2 = vadd.f32 %v207_v60, %v205_v62 }
 0x13f   :  { %v275_v63 = vpop.eup %274 }
 0x140   :  { %v206_v1 = vmul.f32 %v275_v63, %v201_v0 }
 0x142   :  { %v209_v3 = vadd.f32 %v208_v2, %v206_v1 }
 0x144   :  { %v210_v4 = vrot.slane %v209_v3, 4 }
 0x146   :  { %v211_v5 = vadd.f32 %v210_v4, %v209_v3 }
 0x148   :  { %v212_v6 = vrot.slane %v211_v5, 2 }
 0x14a   :  { %v213_v7 = vadd.f32 %v212_v6, %v211_v5 }
 0x14c   :  { %v214_v9 = vrot.slane %v213_v7, 1 }
 0x14e   :  { %v215_v11 = vadd.f32 %v214_v9, %v213_v7 }
 0x150   :  { %v223_v12 = vadd.f32 %v222_v10, %v215_v11 }
 0x152   :  { %224 = vst [vmem:[#allocation3] sm:$0x1] %v223_v12 }
 0x153   :  { %235 = dma.vmem_to_hbm [thread:$0]  %s231_s5, 16, %s233_s19, [#allocation4]  }
 0x154   :  { %300 = dma.done.wait [#allocation4], 16  }
 0x155   :  { %301 = vsyncadd [#allocation4], 4294967280 }
 0x156   :  { %240 = vsyncpa [#allocation4], 1 }

</bundles_post_ra>
